<compile_context>
chip_gen: v7x
topology: tpu7x:2x2x1
jax: 0.10.0
libtpu: 0.0.40
codegen_flags: <defaults>
</compile_context>

<pallas_src>
import functools

import jax
import jax.numpy as jnp
from jax.experimental import pallas as pl
from jax.experimental.pallas import tpu as pltpu

LANES = 128


def _tpu_config():
    """Trace-time heuristics: (target bytes per input tile, # TensorCores)."""
    try:
        kind = jax.devices()[0].device_kind.lower()
    except Exception:
        kind = ""
    if "v5 lite" in kind or "v5e" in kind or "v5lite" in kind:
        return 2 << 20, 1          # 8 MiB pipeline < 16 MiB default scoped VMEM
    if "v6" in kind:
        return 4 << 20, 1          # 16 MiB pipeline < 32 MiB default scoped VMEM
    if "v7" in kind or "tpu7" in kind or "v4" in kind or "v5p" in kind:
        return 4 << 20, 2          # 2 TCs per device; 16 MiB pipeline fits 32 MiB
    return 2 << 20, 1              # conservative default for unknown parts


def _mae_kernel(x_ref, y_ref, o_ref, acc_ref, *,
                block_rows, acc_rows, blocks_per_split, total_rows, apply_mask):
    s = pl.program_id(0)          # core split (parallel on multi-TC parts)
    i = pl.program_id(1)          # reduction step (arbitrary, last grid axis)
    n_chunks = block_rows // acc_rows

    @pl.when(i == 0)
    def _():
        acc_ref[...] = jnp.zeros_like(acc_ref)

    def accumulate(masked):
        # Unclamped global block index -> first row of this block.
        base_row = (s * blocks_per_split + i) * block_rows
        for c in range(n_chunks):               # static unroll, static slices
            r0 = c * acc_rows
            xv = x_ref[pl.ds(r0, acc_rows), :].astype(jnp.float32)
            yv = y_ref[pl.ds(r0, acc_rows), :].astype(jnp.float32)
            d = jnp.abs(xv - yv)
            if masked:
                row_ids = (base_row + r0
                           + jax.lax.broadcasted_iota(jnp.int32, (acc_rows, 1), 0))
                d = jnp.where(row_ids < total_rows, d, 0.0)
            acc_ref[...] += d

    if apply_mask:
        # Only boundary / phantom blocks pay for the mask; interior blocks run
        # the mask-free path (keeps the hot loop at ~3 VPU ops / element).
        base_row = (s * blocks_per_split + i) * block_rows
        interior = base_row + block_rows <= total_rows

        @pl.when(interior)
        def _():
            accumulate(False)

        @pl.when(jnp.logical_not(interior))
        def _():
            accumulate(True)
    else:
        accumulate(False)

    @pl.when(i == pl.num_programs(1) - 1)
    def _():
        # Single cross-lane/sublane reduction per split.
        o_ref[...] = jnp.sum(acc_ref[...]).reshape(1, 1, 1)


def mae_loss(x, y):
    assert x.shape == y.shape, "x and y must have the same shape"
    n_elem = x.size
    if n_elem == 0:
        # torch.mean over an empty tensor is NaN.
        return jnp.float32(jnp.nan)

    itemsize = jnp.dtype(x.dtype).itemsize
    sublane = max(8, 32 // max(1, itemsize))   # 8 f32, 16 bf16, 32 int8/fp8

    xf = x.reshape(-1)
    yf = y.reshape(-1)

    # Lane alignment: free reshape when n_elem % 128 == 0 (no HBM copy).
    # TODO(synk): copy-free unaligned path requires 1-D blocks + in-kernel
    # tail-lane masking; fall back to a single zero-pad copy for now.
    pad = (-n_elem) % LANES
    if pad:
        xf = jnp.pad(xf, (0, pad))
        yf = jnp.pad(yf, (0, pad))

    rows = (n_elem + pad) // LANES
    x2 = xf.reshape(rows, LANES)
    y2 = yf.reshape(rows, LANES)

    tile_bytes, n_cores = _tpu_config()

    # Dtype-aware block: keep each input DMA near tile_bytes, rounded to the
    # dtype's sublane multiple.
    max_block_rows = max(sublane,
                         (tile_bytes // (LANES * itemsize)) // sublane * sublane)
    block_rows = min(max_block_rows, ((rows + sublane - 1) // sublane) * sublane)
    num_blocks = (rows + block_rows - 1) // block_rows

    # Split across TensorCores only where it is real parallelism and there is
    # enough work to amortize a possible phantom block.
    num_splits = n_cores if (n_cores > 1 and num_blocks >= 8) else 1
    blocks_per_split = (num_blocks + num_splits - 1) // num_splits

    exact = (rows % block_rows == 0) and (num_blocks % num_splits == 0)

    # Wider accumulator for large blocks -> shorter serial add chains / more ILP.
    acc_rows = sublane
    cands = (256, 128, 64, 32, 16, 8) if block_rows >= 8192 else (128, 64, 32, 16, 8)
    for cand in cands:
        if cand >= sublane and block_rows % cand == 0:
            acc_rows = cand
            break

    kernel = functools.partial(
        _mae_kernel,
        block_rows=block_rows,
        acc_rows=acc_rows,
        blocks_per_split=blocks_per_split,
        total_rows=rows,
        apply_mask=not exact,
    )

    if num_blocks % num_splits == 0:
        def in_map(s, i):
            return (s * blocks_per_split + i, 0)
    else:
        # Phantom blocks of the last split are clamped to a valid block index;
        # their contribution is fully masked to zero inside the kernel.
        def in_map(s, i):
            return (jnp.minimum(s * blocks_per_split + i, num_blocks - 1), 0)

    first_sem = pltpu.PARALLEL if num_splits > 1 else pltpu.ARBITRARY

    partials = pl.pallas_call(
        kernel,
        out_shape=jax.ShapeDtypeStruct((num_splits, 1, 1), jnp.float32),
        grid_spec=pltpu.PrefetchScalarGridSpec(
            num_scalar_prefetch=0,
            grid=(num_splits, blocks_per_split),
            in_specs=[
                pl.BlockSpec((block_rows, LANES), in_map),
                pl.BlockSpec((block_rows, LANES), in_map),
            ],
            out_specs=pl.BlockSpec((1, 1, 1), lambda s, i: (s, 0, 0)),
            scratch_shapes=[pltpu.VMEM((acc_rows, LANES), jnp.float32)],
        ),
        compiler_params=pltpu.CompilerParams(
            dimension_semantics=(first_sem, pltpu.ARBITRARY),
        ),
        cost_estimate=pl.CostEstimate(
            flops=3 * n_elem,
            transcendentals=0,
            bytes_accessed=2 * n_elem * itemsize + 4 * num_splits,
        ),
    )(x2, y2)

    return jnp.sum(partials) / jnp.float32(n_elem)


if __name__ == "__main__":
    key = jax.random.PRNGKey(0)
    kx, ky = jax.random.split(key)

    # NCHW inputs, matching the PyTorch module's typical usage.
    x = jax.random.normal(kx, (2, 4, 16, 16), dtype=jnp.float32)
    y = jax.random.normal(ky, (2, 4, 16, 16), dtype=jnp.float32)
    loss = mae_loss(x, y)
    jax.block_until_ready(loss)
    ref = jnp.mean(jnp.abs(x - y))
    assert jnp.allclose(loss, ref, rtol=1e-5, atol=1e-6), (loss, ref)

    # Non-block-aligned row count exercises the gated boundary-mask path.
    kx2, ky2 = jax.random.split(jax.random.PRNGKey(1))
    xb = jax.random.normal(kx2, (2, 5, 8, 16), dtype=jnp.float32)   # 1280 elems
    yb = jax.random.normal(ky2, (2, 5, 8, 16), dtype=jnp.float32)
    loss_b = mae_loss(xb, yb)
    jax.block_until_ready(loss_b)
    ref_b = jnp.mean(jnp.abs(xb - yb))
    assert jnp.allclose(loss_b, ref_b, rtol=1e-5, atol=1e-6), (loss_b, ref_b)

    # Non-lane-aligned element count exercises the pad fallback + masking.
    kx3, ky3 = jax.random.split(jax.random.PRNGKey(2))
    xc = jax.random.normal(kx3, (3, 5, 7), dtype=jnp.float32)       # 105 elems
    yc = jax.random.normal(ky3, (3, 5, 7), dtype=jnp.float32)
    loss_c = mae_loss(xc, yc)
    jax.block_until_ready(loss_c)
    ref_c = jnp.mean(jnp.abs(xc - yc))
    assert jnp.allclose(loss_c, ref_c, rtol=1e-5, atol=1e-6), (loss_c, ref_c)

    # bf16 inputs exercise the dtype-aware (16-row sublane) tiling path.
    kx4, ky4 = jax.random.split(jax.random.PRNGKey(3))
    xd = jax.random.normal(kx4, (2, 4, 16, 16), dtype=jnp.bfloat16)
    yd = jax.random.normal(ky4, (2, 4, 16, 16), dtype=jnp.bfloat16)
    loss_d = mae_loss(xd, yd)
    jax.block_until_ready(loss_d)
    ref_d = jnp.mean(jnp.abs(xd.astype(jnp.float32) - yd.astype(jnp.float32)))
    assert jnp.allclose(loss_d, ref_d, rtol=1e-4, atol=1e-5), (loss_d, ref_d)

    print("KERNEL_OK")
</pallas_src>

<mosaic_0001>
module attributes {stable_mosaic.version = 11 : i64} {
  func.func @_mae_kernel(%arg0: i32, %arg1: i32, %arg2: memref<16x128xf32, #tpu.memory_space<vmem>>, %arg3: memref<16x128xf32, #tpu.memory_space<vmem>>, %arg4: memref<1x1x1xf32, #tpu.memory_space<vmem>>, %arg5: memref<16x128xf32, #tpu.memory_space<vmem>>) attributes {dimension_semantics = [#tpu.dimension_semantics<arbitrary>, #tpu.dimension_semantics<arbitrary>], iteration_bounds = array<i64: 1, 1>, scalar_prefetch = 0 : i64, scratch_operands = 1 : i64, tpu.core_type = #tpu.core_type<tc>, window_params = [{transform_indices = @transform_0, window_bounds = array<i64: 16, 128>}, {transform_indices = @transform_1, window_bounds = array<i64: 16, 128>}, {transform_indices = @transform_2, window_bounds = array<i64: 1, 1, 1>}]} {
    %c0_i32 = arith.constant 0 : i32
    %0 = arith.cmpi eq, %arg1, %c0_i32 : i32
    %1 = arith.extui %0 : i1 to i32
    %c0_i32_0 = arith.constant 0 : i32
    %2 = arith.cmpi ne, %1, %c0_i32_0 : i32
    scf.if %2 {
      %cst = arith.constant 0.000000e+00 : f32
      %13 = vector.broadcast %cst : f32 to vector<16x128xf32>
      %c0_10 = arith.constant 0 : index
      %c0_11 = arith.constant 0 : index
      %14 = vector.load %arg5[%c0_10, %c0_11] : memref<16x128xf32, #tpu.memory_space<vmem>>, vector<16x128xf32>
      tpu.vector_store %arg5[%c0_10, %c0_11], %13 {strides = array<i32>} : memref<16x128xf32, #tpu.memory_space<vmem>>, vector<16x128xf32>,
    } else {
    }
    %c0 = arith.constant 0 : index
    %c0_1 = arith.constant 0 : index
    %3 = vector.load %arg2[%c0, %c0_1] : memref<16x128xf32, #tpu.memory_space<vmem>>, vector<16x128xf32>
    %c0_2 = arith.constant 0 : index
    %c0_3 = arith.constant 0 : index
    %4 = vector.load %arg3[%c0_2, %c0_3] : memref<16x128xf32, #tpu.memory_space<vmem>>, vector<16x128xf32>
    %5 = arith.subf %3, %4 : vector<16x128xf32>
    %6 = math.absf %5 : vector<16x128xf32>
    %c0_4 = arith.constant 0 : index
    %c0_5 = arith.constant 0 : index
    %7 = vector.load %arg5[%c0_4, %c0_5] : memref<16x128xf32, #tpu.memory_space<vmem>>, vector<16x128xf32>
    %8 = arith.addf %7, %6 : vector<16x128xf32>
    %c0_6 = arith.constant 0 : index
    %c0_7 = arith.constant 0 : index
    %9 = vector.load %arg5[%c0_6, %c0_7] : memref<16x128xf32, #tpu.memory_space<vmem>>, vector<16x128xf32>
    tpu.vector_store %arg5[%c0_6, %c0_7], %8 {strides = array<i32>} : memref<16x128xf32, #tpu.memory_space<vmem>>, vector<16x128xf32>,
    %c0_i32_8 = arith.constant 0 : i32
    %10 = arith.cmpi eq, %arg1, %c0_i32_8 : i32
    %11 = arith.extui %10 : i1 to i32
    %c0_i32_9 = arith.constant 0 : i32
    %12 = arith.cmpi ne, %11, %c0_i32_9 : i32
    scf.if %12 {
      %c0_10 = arith.constant 0 : index
      %c0_11 = arith.constant 0 : index
      %13 = vector.load %arg5[%c0_10, %c0_11] : memref<16x128xf32, #tpu.memory_space<vmem>>, vector<16x128xf32>
      %14 = vector.shape_cast %13 : vector<16x128xf32> to vector<1x16x128xf32>
      %cst = arith.constant dense<0.000000e+00> : vector<1xf32>
      %15 = vector.multi_reduction <add>, %14, %cst [1, 2] : vector<1x16x128xf32> to vector<1xf32>
      %16 = vector.shape_cast %15 : vector<1xf32> to vector<1x1x1xf32>
      %17 = vector.extract %16[0, 0, 0] : f32 from vector<1x1x1xf32>
      %18 = vector.broadcast %17 : f32 to vector<1x1x1xf32>
      %c0_12 = arith.constant 0 : index
      %c0_13 = arith.constant 0 : index
      %c0_14 = arith.constant 0 : index
      %19 = vector.load %arg4[%c0_12, %c0_13, %c0_14] : memref<1x1x1xf32, #tpu.memory_space<vmem>>, vector<1x1x1xf32>
      tpu.vector_store %arg4[%c0_12, %c0_13, %c0_14], %18 {strides = array<i32>} : memref<1x1x1xf32, #tpu.memory_space<vmem>>, vector<1x1x1xf32>,
    } else {
    }
    return
  }
  func.func @transform_0(%arg0: i32, %arg1: i32) -> (i32, i32) {
    %c1_i32 = arith.constant 1 : i32
    %0 = arith.muli %arg0, %c1_i32 : i32
    %1 = arith.addi %0, %arg1 : i32
    %c0_i32 = arith.constant 0 : i32
    %c0_i32_0 = arith.constant 0 : i32
    return %1, %c0_i32 : i32, i32
  }
  func.func @transform_1(%arg0: i32, %arg1: i32) -> (i32, i32) {
    %c1_i32 = arith.constant 1 : i32
    %0 = arith.muli %arg0, %c1_i32 : i32
    %1 = arith.addi %0, %arg1 : i32
    %c0_i32 = arith.constant 0 : i32
    %c0_i32_0 = arith.constant 0 : i32
    return %1, %c0_i32 : i32, i32
  }
  func.func @transform_2(%arg0: i32, %arg1: i32) -> (i32, i32, i32) {
    %c0_i32 = arith.constant 0 : i32
    %c0_i32_0 = arith.constant 0 : i32
    %c0_i32_1 = arith.constant 0 : i32
    return %arg0, %c0_i32, %c0_i32_0 : i32, i32, i32
  }
}

</mosaic_0001>

<bundles_post_ra>
// kernel: tpu_custom_call.1
= control target key start
LH: loop header
LB: loop body
LE: loop exit
PB: predicated region body
PF: predicated region fallthrough
CT: control target
= control target key end

     0   :  { %7 = vsyncpa [#allocation4], 0  ;;  %s241_s0 = inlined_call_operand.hbm [shape: f32[16,128], index: 0, kind: input, shape index: {}]   ;;  %s242_s1 = inlined_call_operand.hbm [shape: f32[16,128], index: 1, kind: input, shape index: {}]   ;;  %s243_s2 = inlined_call_operand.hbm [shape: f32[1,1,1], index: 2, kind: output, shape index: {}]  }
   0x1   :  { %8 = vsyncpa [#allocation7], 0 }
   0x2   :  { %9 = vsyncpa [#allocation5], 0  ;;  %s185_s9 = smov [#allocation3]   ;;  %s113_s13 = scalar_lea.hbm %s241_s0, 256 }
   0x3   :  { %s19_s10 = sshll.u32 %s185_s9, 4  ;;  %p114_p0 = scmp.ne.s32.totalorder %s241_s0, %s113_s13  ;;  %s20_s10 = int_to_ptr.vmem [resolvable:$true] %s19_s10 }
   0x4   :  { %p117_p1 = scmp.lt.u32.totalorder %s113_s13, %s241_s0 }
   0x6   :  { %p119_p2 = pnand %p117_p1, %p114_p0 }
   0x8   :  { %122 = shalt.err (!%p119_p2)
}
   0x9   :  { %s123_s18 = scalar_lea.vmem %s20_s10, 256  ;;  %p128_p4 = scmp.lt.s32.totalorder %s20_s10, %s20_s10 }
   0xa   :  { %p124_p3 = scmp.ne.s32.totalorder %s20_s10, %s123_s18  ;;  %p129_p5 = scmp.lt.s32.totalorder %s123_s18, %s123_s18 }
   0xc   :  { %p130_p6 = por %p129_p5, %p128_p4 }
   0xe   :  { %p131_p7 = pnand %p130_p6, %p124_p3 }
  0x10   :  { %134 = shalt.err (!%p131_p7)
}
  0x11   :  { %s186_s19 = smov 128   ;;  %s187_s20 = smov 8  }
  0x12   :  { %25 = dma.hbm_to_vmem [thread:$0]  %s241_s0, 256, %s20_s10, [#allocation4], %s186_s19, %s186_s19, %s187_s20  }
  0x13   :  { %s188_s23 = smov [#allocation6]   ;;  %s135_s27 = scalar_lea.hbm %s242_s1, 256 }
  0x14   :  { %s35_s24 = sshll.u32 %s188_s23, 4  ;;  %p136_p8 = scmp.ne.s32.totalorder %s242_s1, %s135_s27  ;;  %s36_s24 = int_to_ptr.vmem [resolvable:$true] %s35_s24 }
  0x15   :  { %p139_p9 = scmp.lt.u32.totalorder %s135_s27, %s242_s1 }
  0x17   :  { %p141_p10 = pnand %p139_p9, %p136_p8 }
  0x19   :  { %144 = shalt.err (!%p141_p10)
}
  0x1a   :  { %s145_s4 = scalar_lea.vmem %s36_s24, 256  ;;  %p150_p12 = scmp.lt.s32.totalorder %s36_s24, %s36_s24 }
  0x1b   :  { %p146_p11 = scmp.ne.s32.totalorder %s36_s24, %s145_s4  ;;  %p151_p13 = scmp.lt.s32.totalorder %s145_s4, %s145_s4 }
  0x1d   :  { %p152_p0 = por %p151_p13, %p150_p12 }
  0x1f   :  { %p153_p1 = pnand %p152_p0, %p146_p11 }
  0x21   :  { %156 = shalt.err (!%p153_p1)
}
  0x22   :  { %41 = dma.hbm_to_vmem [thread:$0]  %s242_s1, 256, %s36_s24, [#allocation7], %s186_s19, %s186_s19, %s187_s20  }
  0x23   :  { %179 = dma.done.wait [#allocation4], 256  }
  0x24   :  { %180 = vsyncadd [#allocation4], 4294967040 }
  0x25   :  { %181 = dma.done.wait [#allocation7], 256  }
  0x26   :  { %182 = vsyncadd [#allocation7], 4294967040  ;;  %v58_v0 = vld [vmem:[#allocation3] sm:$0xff]  ;;  %v59_v1 = vld [vmem:[#allocation3 + $0x8] sm:$0xff]  ;;  %s189_s1 = smov [#allocation8]   ;;  %vm88_vm0 = vcmask 0  }
  0x27   :  { %v60_v2 = vld [vmem:[#allocation6] sm:$0xff]  ;;  %v61_v3 = vld [vmem:[#allocation6 + $0x8] sm:$0xff]  ;;  %s96_s6 = sshll.u32 %s189_s1, 4  ;;  %s97_s6 = int_to_ptr.vmem [resolvable:$true] %s96_s6 }
  0x28   :  { %v62_v4 = vsub.f32 %v58_v0, %v60_v2  ;;  %v63_v5 = vsub.f32 %v59_v1, %v61_v3  ;;  %s157_s8 = scalar_lea.vmem %s97_s6, 16  ;;  %s161_s9 = scalar_lea.vmem %s97_s6, 32 }
  0x29   :  { %p158_p2 = scmp.ne.s32.totalorder %s97_s6, %s157_s8  ;;  %p162_p3 = scmp.lt.s32.totalorder %s97_s6, %s97_s6 }
  0x2a   :  { %v64_v6 = vand.u32 2147483647, %v62_v4  ;;  %v65_v7 = vand.u32 2147483647, %v63_v5  ;;  %p163_p4 = scmp.lt.s32.totalorder %s161_s9, %s157_s8 }
  0x2c   :  { %v77_v8 = vadd.f32 %v65_v7, %v64_v6  ;;  %p164_p5 = por %p163_p4, %p162_p3 }
  0x2e   :  { %78 = vadd.xlane.f32.xlu0 %v77_v8  ;;  %p165_p6 = pnand %p164_p5, %p158_p2 }
  0xbb   :  { %v79_v9 = vpop.xlane.xlu0 %78 }
  0xbc   :  { %v80_v10 = vrot.slane %v79_v9, 4 }
  0xbe   :  { %v81_v11 = vadd.f32 %v80_v10, %v79_v9 }
  0xc0   :  { %v82_v12 = vrot.slane %v81_v11, 2 }
  0xc2   :  { %v83_v13 = vadd.f32 %v82_v12, %v81_v11 }
  0xc4   :  { %v84_v14 = vrot.slane %v83_v13, 1 }
  0xc6   :  { %v85_v15 = vadd.f32 %v84_v14, %v83_v13 }
  0xc8   :  { %106 = vpush %v85_v15 }
  0xf9   :  { %s107_s7 = spop %106 }
  0xfa   :  { %v87_v16 = vstv %s107_s7 }
  0xfb   :  { %89 = vst.msk [vmem:[#allocation8] sm:$0x1] %vm88_vm0, %v87_v16 }
  0xfc   :  { %168 = shalt.err (!%p165_p6)
}
  0xfd   :  { %s169_s12 = scalar_lea.hbm %s243_s2, 16 }
  0xfe   :  { %p170_p7 = scmp.ne.s32.totalorder %s243_s2, %s169_s12  ;;  %p173_p8 = scmp.lt.u32.totalorder %s169_s12, %s243_s2 }
 0x100   :  { %p175_p9 = pnand %p173_p8, %p170_p7 }
 0x102   :  { %178 = shalt.err (!%p175_p9)
}
 0x103   :  { %99 = dma.vmem_to_hbm [thread:$0]  %s97_s6, 16, %s243_s2, [#allocation5]  }
 0x104   :  { %183 = dma.done.wait [#allocation5], 16  }
 0x105   :  { %184 = vsyncadd [#allocation5], 4294967280 }
 0x106   :  { %103 = vsyncpa [#allocation4], 1 }
 0x107   :  { %104 = vsyncpa [#allocation7], 1 }
 0x108   :  { %105 = vsyncpa [#allocation5], 1 }

</bundles_post_ra>
